<compile_context>
chip_gen: v6e
topology: v6e:2x2x1
jax: 0.10.0
libtpu: 0.0.40
codegen_flags: <defaults>
</compile_context>

<pallas_src>
import functools

import jax
import jax.numpy as jnp
from jax.experimental import pallas as pl
from jax.experimental.pallas import tpu as pltpu


def _round_up(v: int, m: int) -> int:
    return ((v + m - 1) // m) * m


def mlp_kernel(x_ref, w1_ref, b1_ref, w2_ref, b2_ref, o_ref):
    # fc1: (TB, Kp)bf16 @ (Kp, Hp)bf16 -> f32 accum on the MXU
    h = jnp.dot(x_ref[...], w1_ref[...], preferred_element_type=jnp.float32)
    h = h + b1_ref[...]            # bias in f32, broadcast over rows
    h = jnp.maximum(h, 0.0)        # ReLU
    # fc2: (TB, Hp)bf16 @ (Hp, Cp)bf16 -> f32 accum on the MXU
    logits = jnp.dot(h.astype(jnp.bfloat16), w2_ref[...],
                     preferred_element_type=jnp.float32)
    logits = logits + b2_ref[...]
    # Sigmoid: exp on EUP, reciprocal on EUP (approx vrcp) -> VPU stays free.
    e = jnp.exp(-logits)
    o_ref[...] = pl.reciprocal(1.0 + e, approx=True).astype(o_ref.dtype)


@functools.partial(jax.jit, static_argnames=("block_b",))
def simple_mlp_forward(x, w1, b1, w2, b2, *, block_b=128):
    """x: (B, input_size) f32; w1: (input_size, hidden); b1: (hidden,);
    w2: (hidden, num_classes); b2: (num_classes,). Returns (B, num_classes) f32."""
    B, K = x.shape
    H = w1.shape[1]
    C = w2.shape[1]

    # Lane/MXU-friendly padded sizes.
    Kp = _round_up(max(K, 128), 128)
    Hp = _round_up(max(H, 128), 128)
    Cp = _round_up(max(C, 128), 128)

    # Batch tile: multiple of 8 sublanes; don't exceed (padded) batch.
    tb = min(block_b, _round_up(B, 8))
    tb = _round_up(tb, 8)
    Bp = _round_up(B, tb)

    bf16 = jnp.bfloat16
    x_p = jnp.zeros((Bp, Kp), bf16).at[:B, :K].set(x.astype(bf16))
    w1_p = jnp.zeros((Kp, Hp), bf16).at[:K, :H].set(w1.astype(bf16))
    b1_p = jnp.zeros((1, Hp), jnp.float32).at[0, :H].set(b1.astype(jnp.float32))
    w2_p = jnp.zeros((Hp, Cp), bf16).at[:H, :C].set(w2.astype(bf16))
    b2_p = jnp.zeros((1, Cp), jnp.float32).at[0, :C].set(b2.astype(jnp.float32))

    grid = (Bp // tb,)

    cost = pl.CostEstimate(
        flops=2 * Bp * (Kp * Hp + Hp * Cp),
        transcendentals=Bp * Cp,
        bytes_accessed=(x_p.size * 2 + w1_p.size * 2 + w2_p.size * 2
                        + b1_p.size * 4 + b2_p.size * 4 + Bp * Cp * 4),
    )

    out_p = pl.pallas_call(
        mlp_kernel,
        out_shape=jax.ShapeDtypeStruct((Bp, Cp), jnp.float32),
        grid_spec=pltpu.PrefetchScalarGridSpec(
            num_scalar_prefetch=0,
            grid=grid,
            in_specs=[
                # Activation tile: marches over the batch.
                pl.BlockSpec((tb, Kp), lambda i: (i, 0)),
                # Weights / biases: same block every step -> VMEM-resident.
                pl.BlockSpec((Kp, Hp), lambda i: (0, 0)),
                pl.BlockSpec((1, Hp), lambda i: (0, 0)),
                pl.BlockSpec((Hp, Cp), lambda i: (0, 0)),
                pl.BlockSpec((1, Cp), lambda i: (0, 0)),
            ],
            out_specs=pl.BlockSpec((tb, Cp), lambda i: (i, 0)),
        ),
        compiler_params=pltpu.CompilerParams(
            dimension_semantics=("parallel",),      # megacore-shard batch on v7x
            vmem_limit_bytes=32 * 1024 * 1024,
        ),
        cost_estimate=cost,
    )(x_p, w1_p, b1_p, w2_p, b2_p)

    return out_p[:B, :C]


def reference_forward(x, w1, b1, w2, b2):
    h = jnp.maximum(x @ w1 + b1[None, :], 0.0)
    return jax.nn.sigmoid(h @ w2 + b2[None, :])


if __name__ == "__main__":
    # Small shapes consistent with the module's forward; batch > tile so the
    # grid actually has multiple steps (256 / 128 = 2 grid points).
    batch = 256
    input_size = 32
    hidden_size = 64
    num_classes = 2

    key = jax.random.PRNGKey(0)
    kx, kw1, kb1, kw2, kb2 = jax.random.split(key, 5)

    x = jax.random.normal(kx, (batch, input_size), dtype=jnp.float32)

    # Deterministic parameter init (uniform with bound = 1/sqrt(fan_in), like
    # PyTorch Linear); weights stored as (in, out) so the kernel does x @ W.
    bound1 = 1.0 / (input_size ** 0.5)
    w1 = jax.random.uniform(kw1, (input_size, hidden_size),
                            minval=-bound1, maxval=bound1, dtype=jnp.float32)
    b1 = jax.random.uniform(kb1, (hidden_size,),
                            minval=-bound1, maxval=bound1, dtype=jnp.float32)

    bound2 = 1.0 / (hidden_size ** 0.5)
    w2 = jax.random.uniform(kw2, (hidden_size, num_classes),
                            minval=-bound2, maxval=bound2, dtype=jnp.float32)
    b2 = jax.random.uniform(kb2, (num_classes,),
                            minval=-bound2, maxval=bound2, dtype=jnp.float32)

    out = simple_mlp_forward(x, w1, b1, w2, b2)
    out = jax.block_until_ready(out)

    ref = reference_forward(x, w1, b1, w2, b2)
    assert out.shape == (batch, num_classes)
    # bf16 MXU operands with f32 accumulation -> tolerance loosened vs pure f32.
    assert jnp.allclose(out, ref, atol=2e-2, rtol=2e-2), (
        float(jnp.max(jnp.abs(out - ref))))

    print("KERNEL_OK")
</pallas_src>

<mosaic_0001>
module attributes {stable_mosaic.version = 11 : i64} {
  func.func @mlp_kernel(%arg0: i32, %arg1: memref<128x128xbf16, #tpu.memory_space<vmem>>, %arg2: memref<128x128xbf16, #tpu.memory_space<vmem>>, %arg3: memref<1x128xf32, #tpu.memory_space<vmem>>, %arg4: memref<128x128xbf16, #tpu.memory_space<vmem>>, %arg5: memref<1x128xf32, #tpu.memory_space<vmem>>, %arg6: memref<128x128xf32, #tpu.memory_space<vmem>>) attributes {dimension_semantics = [#tpu.dimension_semantics<parallel>], iteration_bounds = array<i64: 2>, scalar_prefetch = 0 : i64, scratch_operands = 0 : i64, tpu.core_type = #tpu.core_type<tc>, window_params = [{transform_indices = @transform_0, window_bounds = array<i64: 128, 128>}, {pipeline_mode = #tpu.pipeline_mode<synchronous>, transform_indices = @transform_1, window_bounds = array<i64: 128, 128>}, {pipeline_mode = #tpu.pipeline_mode<synchronous>, transform_indices = @transform_2, window_bounds = array<i64: 1, 128>}, {pipeline_mode = #tpu.pipeline_mode<synchronous>, transform_indices = @transform_3, window_bounds = array<i64: 128, 128>}, {pipeline_mode = #tpu.pipeline_mode<synchronous>, transform_indices = @transform_4, window_bounds = array<i64: 1, 128>}, {transform_indices = @transform_5, window_bounds = array<i64: 128, 128>}]} {
    %c0 = arith.constant 0 : index
    %c0_0 = arith.constant 0 : index
    %0 = vector.load %arg1[%c0, %c0_0] : memref<128x128xbf16, #tpu.memory_space<vmem>>, vector<128x128xbf16>
    %c0_1 = arith.constant 0 : index
    %c0_2 = arith.constant 0 : index
    %1 = vector.load %arg2[%c0_1, %c0_2] : memref<128x128xbf16, #tpu.memory_space<vmem>>, vector<128x128xbf16>
    %cst = arith.constant dense<0.000000e+00> : vector<128x128xf32>
    %2 = tpu.matmul %0, %1, %cst {dimension_numbers = #tpu.dot_dimension_numbers<[1], [0], [0], [1], [0, 0, 1, 1], [], []>} : vector<128x128xbf16>, vector<128x128xbf16>, vector<128x128xf32> -> vector<128x128xf32>
    %c0_3 = arith.constant 0 : index
    %c0_4 = arith.constant 0 : index
    %3 = vector.load %arg3[%c0_3, %c0_4] : memref<1x128xf32, #tpu.memory_space<vmem>>, vector<1x128xf32>
    %4 = vector.broadcast %3 : vector<1x128xf32> to vector<128x128xf32>
    %5 = arith.addf %2, %4 : vector<128x128xf32>
    %cst_5 = arith.constant 0.000000e+00 : f32
    %6 = vector.broadcast %cst_5 : f32 to vector<128x128xf32>
    %7 = arith.maximumf %5, %6 : vector<128x128xf32>
    %8 = arith.truncf %7 : vector<128x128xf32> to vector<128x128xbf16>
    %c0_6 = arith.constant 0 : index
    %c0_7 = arith.constant 0 : index
    %9 = vector.load %arg4[%c0_6, %c0_7] : memref<128x128xbf16, #tpu.memory_space<vmem>>, vector<128x128xbf16>
    %cst_8 = arith.constant dense<0.000000e+00> : vector<128x128xf32>
    %10 = tpu.matmul %8, %9, %cst_8 {dimension_numbers = #tpu.dot_dimension_numbers<[1], [0], [0], [1], [0, 0, 1, 1], [], []>} : vector<128x128xbf16>, vector<128x128xbf16>, vector<128x128xf32> -> vector<128x128xf32>
    %c0_9 = arith.constant 0 : index
    %c0_10 = arith.constant 0 : index
    %11 = vector.load %arg5[%c0_9, %c0_10] : memref<1x128xf32, #tpu.memory_space<vmem>>, vector<1x128xf32>
    %12 = vector.broadcast %11 : vector<1x128xf32> to vector<128x128xf32>
    %13 = arith.addf %10, %12 : vector<128x128xf32>
    %cst_11 = arith.constant 0.000000e+00 : f32
    %14 = vector.broadcast %cst_11 : f32 to vector<128x128xf32>
    %15 = arith.subf %14, %13 : vector<128x128xf32>
    %16 = math.exp %15 : vector<128x128xf32>
    %cst_12 = arith.constant 1.000000e+00 : f32
    %17 = vector.broadcast %cst_12 : f32 to vector<128x128xf32>
    %18 = arith.addf %17, %16 : vector<128x128xf32>
    %19 = tpu.reciprocal %18 {approx = true} : vector<128x128xf32> -> vector<128x128xf32>
    %c0_13 = arith.constant 0 : index
    %c0_14 = arith.constant 0 : index
    %20 = vector.load %arg6[%c0_13, %c0_14] : memref<128x128xf32, #tpu.memory_space<vmem>>, vector<128x128xf32>
    tpu.vector_store %arg6[%c0_13, %c0_14], %19 {strides = array<i32>} : memref<128x128xf32, #tpu.memory_space<vmem>>, vector<128x128xf32>,
    return
  }
  func.func @transform_0(%arg0: i32) -> (i32, i32) {
    %c0_i32 = arith.constant 0 : i32
    %c0_i32_0 = arith.constant 0 : i32
    return %arg0, %c0_i32 : i32, i32
  }
  func.func @transform_1(%arg0: i32) -> (i32, i32) {
    %c0_i32 = arith.constant 0 : i32
    %c0_i32_0 = arith.constant 0 : i32
    %c0_i32_1 = arith.constant 0 : i32
    return %c0_i32, %c0_i32_0 : i32, i32
  }
  func.func @transform_2(%arg0: i32) -> (i32, i32) {
    %c0_i32 = arith.constant 0 : i32
    %c0_i32_0 = arith.constant 0 : i32
    %c0_i32_1 = arith.constant 0 : i32
    return %c0_i32, %c0_i32_0 : i32, i32
  }
  func.func @transform_3(%arg0: i32) -> (i32, i32) {
    %c0_i32 = arith.constant 0 : i32
    %c0_i32_0 = arith.constant 0 : i32
    %c0_i32_1 = arith.constant 0 : i32
    return %c0_i32, %c0_i32_0 : i32, i32
  }
  func.func @transform_4(%arg0: i32) -> (i32, i32) {
    %c0_i32 = arith.constant 0 : i32
    %c0_i32_0 = arith.constant 0 : i32
    %c0_i32_1 = arith.constant 0 : i32
    return %c0_i32, %c0_i32_0 : i32, i32
  }
  func.func @transform_5(%arg0: i32) -> (i32, i32) {
    %c0_i32 = arith.constant 0 : i32
    %c0_i32_0 = arith.constant 0 : i32
    return %arg0, %c0_i32 : i32, i32
  }
}

</mosaic_0001>

<bundles_post_ra>
// kernel: simple_mlp_forward.1
= control target key start
LH: loop header
LB: loop body
LE: loop exit
PB: predicated region body
PF: predicated region fallthrough
CT: control target
= control target key end

     0   :  { %s1072_s18 = smov 0   ;;  %s1193_s0 = inlined_call_operand.vmem [shape: bf16[256,128], index: 0, kind: input, shape index: {}]   ;;  %s1194_s1 = inlined_call_operand.vmem [shape: bf16[128,128], index: 1, kind: input, shape index: {}]   ;;  %s1195_s2 = inlined_call_operand.vmem [shape: f32[1,128], index: 2, kind: input, shape index: {}]   ;;  %s1196_s3 = inlined_call_operand.vmem [shape: bf16[128,128], index: 3, kind: input, shape index: {}]   ;;  %s1197_s4 = inlined_call_operand.vmem [shape: f32[1,128], index: 4, kind: input, shape index: {}]   ;;  %s1198_s5 = inlined_call_operand.vmem [shape: f32[256,128], index: 5, kind: output, shape index: {}]  }
   0x1 LB: > { %s805_s19 = sadd.s32 4294967295, %s1040_s18   ;;  %p809_p0 = scmp.ge.s32.totalorder %s1040_s18, 1  ;;  %s1040_s18 = sphi %s1072_s18, %s15_s18  }
   0x2   : > { %p188_p1 = scmp.lt.s32.totalorder %s1040_s18, 3 }
   0x4   : > { %p189_p2 = pnand %p809_p0, %p188_p1 }
   0x5   : > { %s810_s22 = sshll.u32 (!%p189_p2), %s805_s19, 4 }
   0x6   : > { %192 = sbr.rel (%p189_p2) target bundleno = 511 (0x1ff), region = 40  ;;  %p217_p3 = scmp.lt.s32.totalorder (!%p189_p2), %s810_s22, 31 }
   0xb   : > { %v946_v0 = vld [vmem:[%s1194_s1 + $0x38] sm:$0xff]   ;;  %v947_v1 = vld [vmem:[%s1194_s1 + $0x30] sm:$0xff]   ;;  %s1200_s22 = smov (!%p217_p3, %s810_s22), 31  ;;  %v948_v2 = vld [vmem:[%s1194_s1 + $0x28] sm:$0xff]  }
   0xc   : > { %874 = vmatprep.subr.bf16.mxu0 %v946_v0  ;;  %s811_s27 = sshll.u32 %s1200_s22, 2  ;;  %v949_v3 = vld [vmem:[%s1194_s1 + $0x20] sm:$0xff]   ;;  %v950_v5 = vld [vmem:[%s1194_s1 + $0x18] sm:$0xff]   ;;  %v951_v6 = vld [vmem:[%s1194_s1 + $0x10] sm:$0xff]   ;;  %s813_s13 = sshll.u32 %s1200_s22, 3 }
   0xd   : > { %875 = vmatpush3.bf16.msra.mxu0 %v946_v0  ;;  %s1095_s30 = scalar_lea.vmem %s1193_s0, %s811_s27  ;;  %v962_v7 = vld [vmem:[%s1196_s3 + $0x38] sm:$0xff]   ;;  %v963_v8 = vld [vmem:[%s1196_s3 + $0x30] sm:$0xff]   ;;  %v952_v9 = vld [vmem:[%s1194_s1 + $0x8] sm:$0xff]   ;;  %s1172_s16 = scalar_lea.vmem %s1198_s5, %s813_s13 }
   0xe   : > { %876 = vmatprep.subr.bf16.mxu0 %v947_v1  ;;  %v954_v4 = vld [vmem:[%s1095_s30] sm:$0xff]   ;;  %906 = vmatprep.subr.bf16.mxu1 %v962_v7  ;;  %v964_v10 = vld [vmem:[%s1196_s3 + $0x28] sm:$0xff]   ;;  %v966_v13 = vld [vmem:[%s1196_s3 + $0x18] sm:$0xff]  }
   0xf   : > { %890 = vmatprep.mubr.bf16.mxu0 %v954_v4  ;;  %907 = vmatpush3.bf16.msra.mxu1 %v962_v7  ;;  %v953_v11 = vld [vmem:[%s1194_s1] sm:$0xff]   ;;  %v955_v14 = vld [vmem:[%s1095_s30 + $0x8] sm:$0xff]   ;;  %v956_v15 = vld [vmem:[%s1095_s30 + $0x10] sm:$0xff]  }
  0x10   : > { %908 = vmatprep.subr.bf16.mxu1 %v963_v8  ;;  %v965_v12 = vld [vmem:[%s1196_s3 + $0x20] sm:$0xff]   ;;  %v957_v16 = vld [vmem:[%s1095_s30 + $0x18] sm:$0xff]   ;;  %v959_v18 = vld [vmem:[%s1095_s30 + $0x28] sm:$0xff]  }
  0x11   : > { %877 = vmatpush3.bf16.msra.mxu0 %v947_v1  ;;  %v958_v17 = vld [vmem:[%s1095_s30 + $0x20] sm:$0xff]   ;;  %v960_v19 = vld [vmem:[%s1095_s30 + $0x30] sm:$0xff]   ;;  %v961_v20 = vld [vmem:[%s1095_s30 + $0x38] sm:$0xff]  }
  0x12   : > { %878 = vmatprep.subr.bf16.mxu0 %v948_v2  ;;  %v967_v21 = vld [vmem:[%s1196_s3 + $0x10] sm:$0xff]   ;;  %v968_v22 = vld [vmem:[%s1196_s3 + $0x8] sm:$0xff]   ;;  %v969_v23 = vld [vmem:[%s1196_s3] sm:$0xff]  }
  0x13   : > { %909 = vmatpush3.bf16.msra.mxu1 %v963_v8  ;;  %v814_v26 = vld [vmem:[%s1195_s2] ss:$0 sm:$0xff] }
  0x14   : > { %910 = vmatprep.subr.bf16.mxu1 %v964_v10 }
  0x15   : > { %879 = vmatpush3.bf16.msra.mxu0 %v948_v2 }
  0x16   : > { %880 = vmatprep.subr.bf16.mxu0 %v949_v3 }
  0x17   : > { %911 = vmatpush3.bf16.msra.mxu1 %v964_v10 }
  0x18   : > { %912 = vmatprep.subr.bf16.mxu1 %v965_v12 }
  0x19   : > { %881 = vmatpush3.bf16.msra.mxu0 %v949_v3 }
  0x1a   : > { %882 = vmatprep.subr.bf16.mxu0 %v950_v5 }
  0x1b   : > { %913 = vmatpush3.bf16.msra.mxu1 %v965_v12 }
  0x1c   : > { %914 = vmatprep.subr.bf16.mxu1 %v966_v13 }
  0x1d   : > { %883 = vmatpush3.bf16.msra.mxu0 %v950_v5 }
  0x1e   : > { %884 = vmatprep.subr.bf16.mxu0 %v951_v6 }
  0x1f   : > { %915 = vmatpush3.bf16.msra.mxu1 %v966_v13 }
  0x20   : > { %916 = vmatprep.subr.bf16.mxu1 %v967_v21 }
  0x21   : > { %885 = vmatpush3.bf16.msra.mxu0 %v951_v6 }
  0x22   : > { %886 = vmatprep.subr.bf16.mxu0 %v952_v9 }
  0x23   : > { %917 = vmatpush3.bf16.msra.mxu1 %v967_v21 }
  0x24   : > { %918 = vmatprep.subr.bf16.mxu1 %v968_v22 }
  0x25   : > { %887 = vmatpush3.bf16.msra.mxu0 %v952_v9 }
  0x26   : > { %888 = vmatprep.subr.bf16.mxu0 %v953_v11 }
  0x27   : > { %919 = vmatpush3.bf16.msra.mxu1 %v968_v22 }
  0x28   : > { %920 = vmatprep.subr.bf16.mxu1 %v969_v23 }
  0x29   : > { %889 = vmatpush3.bf16.msra.mxu0 %v953_v11 }
  0x2b   : > { %921 = vmatpush3.bf16.msra.mxu1 %v969_v23 }
  0x2c   : > { %891 = vmatmul.mubr.bf16.vlgmr.msra.gmra.mxu0 %v955_v14 }
  0x2d   : > { %894 = vmatprep.mubr.bf16.mxu0 %v956_v15 }
  0x34   : > { %895 = vmatmul.mubr.bf16.gmra.mxu0 %v957_v16 }
  0x35   : > { %898 = vmatprep.mubr.bf16.mxu0 %v958_v17  ;;  %v1150_v17 = vld [vmem:[%s1197_s4] ss:$0 sm:$0xff] }
  0x3c   : > { %899 = vmatmul.mubr.bf16.gmra.mxu0 %v959_v18 }
  0x3d   : > { %902 = vmatprep.mubr.bf16.mxu0 %v960_v19 }
  0x44   : > { %903 = vmatmul.mubr.bf16.gmra.mxu0 %v961_v20 }
  0xec   : > { %v892_v24 = vpop.f32.mrf.mxu0 }
  0xed   : > { %v407_v30 = vadd.f32 %v892_v24, %v814_v26 }
  0xee   : > { %v398_v25 = vpop.f32.mrf.mxu0 }
  0xef   : > { %v399_v28 = vadd.f32 %v814_v26, %v398_v25  ;;  %v463_v37 = vmax.f32 %v407_v30, 0.0 }
  0xf0   : > { %v893_v27 = vpop.f32.mrf.mxu0 }
  0xf1   : > { %v410_v29 = vadd.f32 %v893_v27, %v814_v26  ;;  %v461_v35 = vmax.f32 %v399_v28, 0.0 }
  0xf2   : > { %v401_v31 = vpop.f32.mrf.mxu0 }
  0xf3   : > { %v402_v32 = vadd.f32 %v814_v26, %v401_v31  ;;  %v464_v33 = vmax.f32 %v410_v29, 0.0 }
  0xf4   : > { %v896_v34 = vpop.f32.mrf.mxu0 }
  0xf5   : > { %v462_v36 = vmax.f32 %v402_v32, 0.0  ;;  %v478_v40 = vpack.c.bf16 %v464_v33, %v463_v37  ;;  %v423_v44 = vadd.f32 %v896_v34, %v814_v26 }
  0xf6   : > { %v414_v38 = vpop.f32.mrf.mxu0 }
  0xf7   : > { %v477_v39 = vpack.c.bf16 %v462_v36, %v461_v35  ;;  %v415_v42 = vadd.f32 %v814_v26, %v414_v38  ;;  %v467_v51 = vmax.f32 %v423_v44, 0.0 }
  0xf8   : > { %v897_v41 = vpop.f32.mrf.mxu0 }
  0xf9   : > { %v426_v43 = vadd.f32 %v897_v41, %v814_v26  ;;  %922 = vmatprep.mubr.bf16.mxu1 %v477_v39  ;;  %v465_v49 = vmax.f32 %v415_v42, 0.0 }
  0xfa   : > { %v417_v45 = vpop.f32.mrf.mxu0  ;;  %923 = vmatmul.mubr.bf16.vlgmr.msra.gmra.mxu1 %v478_v40 }
  0xfb   : > { %v418_v46 = vadd.f32 %v814_v26, %v417_v45  ;;  %v468_v47 = vmax.f32 %v426_v43, 0.0 }
  0xfc   : > { %v900_v48 = vpop.f32.mrf.mxu0 }
  0xfd   : > { %v466_v50 = vmax.f32 %v418_v46, 0.0  ;;  %v480_v54 = vpack.c.bf16 %v468_v47, %v467_v51  ;;  %v439_v58 = vadd.f32 %v900_v48, %v814_v26 }
  0xfe   : > { %v430_v52 = vpop.f32.mrf.mxu0 }
  0xff   : > { %v479_v53 = vpack.c.bf16 %v466_v50, %v465_v49  ;;  %v431_v56 = vadd.f32 %v814_v26, %v430_v52  ;;  %v471_v1 = vmax.f32 %v439_v58, 0.0 }
 0x100   : > { %v901_v55 = vpop.f32.mrf.mxu0 }
 0x101   : > { %v442_v57 = vadd.f32 %v901_v55, %v814_v26  ;;  %926 = vmatprep.mubr.bf16.mxu1 %v479_v53  ;;  %v469_v63 = vmax.f32 %v431_v56, 0.0 }
 0x102   : > { %v433_v59 = vpop.f32.mrf.mxu0  ;;  %927 = vmatmul.mubr.bf16.gmra.mxu1 %v480_v54 }
 0x103   : > { %v434_v60 = vadd.f32 %v814_v26, %v433_v59  ;;  %v472_v61 = vmax.f32 %v442_v57, 0.0 }
 0x104   : > { %v904_v62 = vpop.f32.mrf.mxu0 }
 0x105   : > { %v470_v0 = vmax.f32 %v434_v60, 0.0  ;;  %v482_v4 = vpack.c.bf16 %v472_v61, %v471_v1  ;;  %v455_v8 = vadd.f32 %v904_v62, %v814_v26 }
 0x106   : > { %v446_v2 = vpop.f32.mrf.mxu0 }
 0x107   : > { %v481_v3 = vpack.c.bf16 %v470_v0, %v469_v63  ;;  %v447_v6 = vadd.f32 %v814_v26, %v446_v2  ;;  %v475_v14 = vmax.f32 %v455_v8, 0.0 }
 0x108   : > { %v905_v5 = vpop.f32.mrf.mxu0 }
 0x109   : > { %v458_v7 = vadd.f32 %v905_v5, %v814_v26  ;;  %930 = vmatprep.mubr.bf16.mxu1 %v481_v3  ;;  %v473_v12 = vmax.f32 %v447_v6, 0.0 }
 0x10a   : > { %v449_v9 = vpop.f32.mrf.mxu0  ;;  %931 = vmatmul.mubr.bf16.gmra.mxu1 %v482_v4 }
 0x10b   : > { %v450_v10 = vadd.f32 %v814_v26, %v449_v9  ;;  %v476_v11 = vmax.f32 %v458_v7, 0.0 }
 0x10d   : > { %v474_v13 = vmax.f32 %v450_v10, 0.0  ;;  %v484_v16 = vpack.c.bf16 %v476_v11, %v475_v14 }
 0x10f   : > { %v483_v15 = vpack.c.bf16 %v474_v13, %v473_v12 }
 0x111   : > { %934 = vmatprep.mubr.bf16.mxu1 %v483_v15 }
 0x112   : > { %935 = vmatmul.mubr.bf16.gmra.mxu1 %v484_v16 }
 0x1ba   : > { %v924_v18 = vpop.f32.mrf.mxu1 }
 0x1bb   : > { %v599_v19 = vadd.f32 %v924_v18, %v1150_v17 }
 0x1bc   : > { %v590_v20 = vpop.f32.mrf.mxu1 }
 0x1bd   : > { %v655_v21 = vsub.f32 0.0, %v599_v19  ;;  %v591_v22 = vadd.f32 %v1150_v17, %v590_v20 }
 0x1be   : > { %v925_v23 = vpop.f32.mrf.mxu1 }
 0x1bf   : > { %v673_v24 = vmul.f32 1.442695, %v655_v21  ;;  %v653_v25 = vsub.f32 0.0, %v591_v22  ;;  %v602_v26 = vadd.f32 %v925_v23, %v1150_v17 }
 0x1c0   : > { %v593_v27 = vpop.f32.mrf.mxu1 }
 0x1c1   : > { %970 = vpow2.f32 %v673_v24  ;;  %v669_v28 = vmul.f32 1.442695, %v653_v25  ;;  %v656_v29 = vsub.f32 0.0, %v602_v26  ;;  %v594_v30 = vadd.f32 %v1150_v17, %v593_v27 }
 0x1c2   : > { %v928_v31 = vpop.f32.mrf.mxu1 }
 0x1c3   : > { %972 = vpow2.f32 %v669_v28  ;;  %v675_v32 = vmul.f32 1.442695, %v656_v29  ;;  %v654_v33 = vsub.f32 0.0, %v594_v30  ;;  %v615_v34 = vadd.f32 %v928_v31, %v1150_v17 }
 0x1c4   : > { %v606_v35 = vpop.f32.mrf.mxu1 }
 0x1c5   : > { %974 = vpow2.f32 %v675_v32  ;;  %v671_v36 = vmul.f32 1.442695, %v654_v33  ;;  %v659_v37 = vsub.f32 0.0, %v615_v34  ;;  %v607_v38 = vadd.f32 %v1150_v17, %v606_v35 }
 0x1c6   : > { %v929_v39 = vpop.f32.mrf.mxu1 }
 0x1c7   : > { %976 = vpow2.f32 %v671_v36  ;;  %v681_v40 = vmul.f32 1.442695, %v659_v37  ;;  %v657_v41 = vsub.f32 0.0, %v607_v38  ;;  %v618_v42 = vadd.f32 %v929_v39, %v1150_v17 }
 0x1c8   : > { %v609_v43 = vpop.f32.mrf.mxu1 }
 0x1c9   : > { %978 = vpow2.f32 %v681_v40  ;;  %v677_v44 = vmul.f32 1.442695, %v657_v41  ;;  %v660_v45 = vsub.f32 0.0, %v618_v42  ;;  %v610_v46 = vadd.f32 %v1150_v17, %v609_v43 }
 0x1ca   : > { %v932_v47 = vpop.f32.mrf.mxu1 }
 0x1cb   : > { %980 = vpow2.f32 %v677_v44  ;;  %v683_v48 = vmul.f32 1.442695, %v660_v45  ;;  %v658_v49 = vsub.f32 0.0, %v610_v46  ;;  %v631_v50 = vadd.f32 %v932_v47, %v1150_v17 }
 0x1cc   : > { %v622_v51 = vpop.f32.mrf.mxu1 }
 0x1cd   : > { %982 = vpow2.f32 %v683_v48  ;;  %v679_v52 = vmul.f32 1.442695, %v658_v49  ;;  %v663_v53 = vsub.f32 0.0, %v631_v50  ;;  %v623_v54 = vadd.f32 %v1150_v17, %v622_v51 }
 0x1ce   : > { %v971_v55 = vpop.eup %970  ;;  %v933_v56 = vpop.f32.mrf.mxu1 }
 0x1cf   : > { %v703_v57 = vadd.f32 1.0, %v971_v55  ;;  %984 = vpow2.f32 %v679_v52  ;;  %v689_v58 = vmul.f32 1.442695, %v663_v53  ;;  %v661_v59 = vsub.f32 0.0, %v623_v54 }
 0x1d0   : > { %v973_v60 = vpop.eup %972  ;;  %v634_v61 = vadd.f32 %v933_v56, %v1150_v17  ;;  %v625_v62 = vpop.f32.mrf.mxu1 }
 0x1d1   : > { %986 = vrcp.f32 %v703_v57  ;;  %v701_v63 = vadd.f32 1.0, %v973_v60  ;;  %v685_v0 = vmul.f32 1.442695, %v661_v59  ;;  %v626_v1 = vadd.f32 %v1150_v17, %v625_v62 }
 0x1d2   : > { %v975_v2 = vpop.eup %974  ;;  %988 = vpow2.f32 %v689_v58  ;;  %v664_v3 = vsub.f32 0.0, %v634_v61  ;;  %v936_v4 = vpop.f32.mrf.mxu1 }
 0x1d3   : > { %990 = vrcp.f32 %v701_v63  ;;  %v704_v5 = vadd.f32 1.0, %v975_v2  ;;  %v662_v6 = vsub.f32 0.0, %v626_v1  ;;  %v647_v7 = vadd.f32 %v936_v4, %v1150_v17 }
 0x1d4   : > { %v977_v8 = vpop.eup %976  ;;  %992 = vpow2.f32 %v685_v0  ;;  %v691_v9 = vmul.f32 1.442695, %v664_v3  ;;  %v638_v10 = vpop.f32.mrf.mxu1 }
 0x1d5   : > { %994 = vrcp.f32 %v704_v5  ;;  %v702_v11 = vadd.f32 1.0, %v977_v8  ;;  %v687_v12 = vmul.f32 1.442695, %v662_v6  ;;  %v667_v13 = vsub.f32 0.0, %v647_v7 }
 0x1d6   : > { %v979_v14 = vpop.eup %978  ;;  %996 = vpow2.f32 %v691_v9  ;;  %v639_v15 = vadd.f32 %v1150_v17, %v638_v10  ;;  %v937_v16 = vpop.f32.mrf.mxu1 }
 0x1d7   : > { %998 = vrcp.f32 %v702_v11  ;;  %v707_v18 = vadd.f32 1.0, %v979_v14  ;;  %v697_v19 = vmul.f32 1.442695, %v667_v13  ;;  %v650_v20 = vadd.f32 %v937_v16, %v1150_v17 }
 0x1d8   : > { %v981_v21 = vpop.eup %980  ;;  %1000 = vpow2.f32 %v687_v12  ;;  %v665_v22 = vsub.f32 0.0, %v639_v15  ;;  %v641_v23 = vpop.f32.mrf.mxu1 }
 0x1d9   : > { %1002 = vrcp.f32 %v707_v18  ;;  %v705_v24 = vadd.f32 1.0, %v981_v21  ;;  %v668_v25 = vsub.f32 0.0, %v650_v20  ;;  %v642_v26 = vadd.f32 %v1150_v17, %v641_v23 }
 0x1da   : > { %v983_v27 = vpop.eup %982  ;;  %1004 = vpow2.f32 %v697_v19  ;;  %v693_v28 = vmul.f32 1.442695, %v665_v22 }
 0x1db   : > { %1006 = vrcp.f32 %v705_v24  ;;  %v708_v29 = vadd.f32 1.0, %v983_v27  ;;  %v699_v30 = vmul.f32 1.442695, %v668_v25  ;;  %v666_v31 = vsub.f32 0.0, %v642_v26 }
 0x1dc   : > { %v985_v32 = vpop.eup %984  ;;  %1008 = vpow2.f32 %v693_v28 }
 0x1dd   : > { %1010 = vrcp.f32 %v708_v29  ;;  %v706_v33 = vadd.f32 1.0, %v985_v32  ;;  %v695_v17 = vmul.f32 1.442695, %v666_v31 }
 0x1de   : > { %v987_v34 = vpop.eup %986  ;;  %1012 = vpow2.f32 %v699_v30 }
 0x1df   : > { %v989_v35 = vpop.eup %988  ;;  %735 = vst [vmem:[%s1172_s16 + $0x10] sm:$0xff] %v987_v34  ;;  %1014 = vrcp.f32 %v706_v33 }
 0x1e0   : > { %v991_v36 = vpop.eup %990  ;;  %v711_v37 = vadd.f32 1.0, %v989_v35  ;;  %1016 = vpow2.f32 %v695_v17 }
 0x1e1   : > { %v993_v38 = vpop.eup %992  ;;  %733 = vst [vmem:[%s1172_s16] sm:$0xff] %v991_v36 }
 0x1e2   : > { %v995_v39 = vpop.eup %994  ;;  %1018 = vrcp.f32 %v711_v37  ;;  %v709_v40 = vadd.f32 1.0, %v993_v38 }
 0x1e3   : > { %v997_v41 = vpop.eup %996  ;;  %736 = vst [vmem:[%s1172_s16 + $0x18] sm:$0xff] %v995_v39 }
 0x1e4   : > { %v999_v42 = vpop.eup %998  ;;  %1020 = vrcp.f32 %v709_v40  ;;  %v712_v43 = vadd.f32 1.0, %v997_v41 }
 0x1e5   : > { %v1001_v44 = vpop.eup %1000  ;;  %734 = vst [vmem:[%s1172_s16 + $0x8] sm:$0xff] %v999_v42 }
 0x1e6   : > { %v1003_v45 = vpop.eup %1002  ;;  %1022 = vrcp.f32 %v712_v43  ;;  %v710_v46 = vadd.f32 1.0, %v1001_v44 }
 0x1e7   : > { %v1005_v47 = vpop.eup %1004  ;;  %739 = vst [vmem:[%s1172_s16 + $0x30] sm:$0xff] %v1003_v45 }
 0x1e8   : > { %v1007_v48 = vpop.eup %1006  ;;  %1024 = vrcp.f32 %v710_v46  ;;  %v715_v49 = vadd.f32 1.0, %v1005_v47 }
 0x1e9   : > { %v1009_v50 = vpop.eup %1008  ;;  %737 = vst [vmem:[%s1172_s16 + $0x20] sm:$0xff] %v1007_v48 }
 0x1ea   : > { %v1011_v51 = vpop.eup %1010  ;;  %1026 = vrcp.f32 %v715_v49  ;;  %v713_v52 = vadd.f32 1.0, %v1009_v50 }
 0x1eb   : > { %v1013_v53 = vpop.eup %1012  ;;  %740 = vst [vmem:[%s1172_s16 + $0x38] sm:$0xff] %v1011_v51 }
 0x1ec   : > { %v1015_v54 = vpop.eup %1014  ;;  %1028 = vrcp.f32 %v713_v52  ;;  %v716_v55 = vadd.f32 1.0, %v1013_v53 }
 0x1ed   : > { %v1017_v56 = vpop.eup %1016  ;;  %738 = vst [vmem:[%s1172_s16 + $0x28] sm:$0xff] %v1015_v54 }
 0x1ee   : > { %1030 = vrcp.f32 %v716_v55  ;;  %v714_v57 = vadd.f32 1.0, %v1017_v56 }
 0x1ef   : > { %v1019_v58 = vpop.eup %1018 }
 0x1f0   : > { %743 = vst [vmem:[%s1172_s16 + $0x50] sm:$0xff] %v1019_v58  ;;  %1032 = vrcp.f32 %v714_v57 }
 0x1f1   : > { %v1021_v59 = vpop.eup %1020 }
 0x1f2   : > { %741 = vst [vmem:[%s1172_s16 + $0x40] sm:$0xff] %v1021_v59 }
 0x1f3   : > { %v1023_v60 = vpop.eup %1022 }
 0x1f4   : > { %744 = vst [vmem:[%s1172_s16 + $0x58] sm:$0xff] %v1023_v60 }
 0x1f5   : > { %v1025_v61 = vpop.eup %1024 }
 0x1f6   : > { %742 = vst [vmem:[%s1172_s16 + $0x48] sm:$0xff] %v1025_v61 }
 0x1f7   : > { %v1027_v62 = vpop.eup %1026 }
 0x1f8   : > { %747 = vst [vmem:[%s1172_s16 + $0x70] sm:$0xff] %v1027_v62 }
 0x1f9   : > { %v1029_v63 = vpop.eup %1028 }
 0x1fa   : > { %745 = vst [vmem:[%s1172_s16 + $0x60] sm:$0xff] %v1029_v63 }
 0x1fb   : > { %v1031_v0 = vpop.eup %1030 }
 0x1fc   : > { %748 = vst [vmem:[%s1172_s16 + $0x78] sm:$0xff] %v1031_v0 }
 0x1fd   : > { %v1033_v1 = vpop.eup %1032 }
 0x1fe   : > { %746 = vst [vmem:[%s1172_s16 + $0x68] sm:$0xff] %v1033_v1 }
 0x1ff PF: > { %s15_s18 = sadd.s32 1, %s1040_s18  }
 0x200   : > { %p12_p4 = scmp.ge.s32.totalorder %s15_s18, 4  }
 0x202   :  { %14 = sbr.rel (!%p12_p4) target bundleno = 1 (0x1), region = 70 }

</bundles_post_ra>
